<compile_context>
chip_gen: v7x
topology: tpu7x:2x2x1
jax: 0.10.0
libtpu: 0.0.40
codegen_flags: <defaults>
</compile_context>

<pallas_src>
import functools

import jax
import jax.numpy as jnp
from jax.experimental import pallas as pl
from jax.experimental.pallas import tpu as pltpu

LANE = 128     # vreg lane width / MXU column granularity
SUBLANE = 8    # f32 sublane granularity


def _round_up(n: int, m: int) -> int:
    return ((n + m - 1) // m) * m


# ----------------------------------------------------------------------------
# Kernel body: fused Linear -> ReLU -> ... -> Linear for one batch tile.
# refs = (x_ref, w0_ref, b0_ref, ..., w_{L-1}_ref, b_{L-1}_ref, o_ref)
# All operands are zero-padded lane-dense; padded rows/cols stay harmless and
# are sliced off outside the kernel.  Matmuls: MXU, f32 accumulation.
# ----------------------------------------------------------------------------
def _mlp_fused_kernel(*refs, n_layers: int):
    x_ref = refs[0]
    o_ref = refs[-1]
    wb = refs[1:-1]

    h = x_ref[...]                                     # compute-dtype MXU input
    for i in range(n_layers):
        w = wb[2 * i][...]
        b = wb[2 * i + 1][...]                         # (1, N) f32, broadcasts
        y = jnp.dot(h, w, preferred_element_type=jnp.float32) + b   # f32 acc
        if i < n_layers - 1:
            # cast first, ReLU in compute dtype (bf16 VPU on v6e/v7x; this is
            # plain f32 when compute_dtype=float32).
            h = jnp.maximum(y.astype(w.dtype), 0.0)
        else:
            h = y
    o_ref[...] = h.astype(o_ref.dtype)                 # bf16 writeback


# ----------------------------------------------------------------------------
# One-time parameter preparation (hoisted OUT of the per-call forward).
# ----------------------------------------------------------------------------
def prepare_params(params, *, compute_dtype=jnp.bfloat16):
    """Pad every feature dim to a multiple of 128 and cast to compute_dtype.

    params: list of (w, b) with w: (in, out)  [= W_pytorch.T], b: (out,).
    Returns (flat_wb, dims, dims_p):
      flat_wb : [w0_pad, b0_pad, w1_pad, b1_pad, ...]   (device arrays)
      dims    : logical feature dims (input_dim, h0, ..., nb_classes)
      dims_p  : lane-padded dims (multiples of 128)
    """
    dims = tuple([params[0][0].shape[0]] + [w.shape[1] for (w, _) in params])
    dims_p = tuple(_round_up(d, LANE) for d in dims)
    flat = []
    for li, (w, b) in enumerate(params):
        kin, kout = w.shape
        kp, np_ = dims_p[li], dims_p[li + 1]
        w_pad = jnp.zeros((kp, np_), compute_dtype).at[:kin, :kout].set(
            w.astype(compute_dtype))
        b_pad = jnp.zeros((1, np_), jnp.float32).at[0, :kout].set(
            b.astype(jnp.float32))                     # bias stays f32 (epilogue)
        flat += [w_pad, b_pad]
    return flat, dims, dims_p


def _resident_spec(shape, single_buffer: bool):
    """BlockSpec for a weight/bias that is identical for every grid step."""
    if single_buffer:
        try:
            # Constant index_map -> one VMEM buffer is enough; halves footprint.
            return pl.BlockSpec(shape, lambda i: (0, 0),
                                pipeline_mode=pl.Buffered(1))
        except TypeError:
            pass  # older jax without pipeline_mode kwarg
    return pl.BlockSpec(shape, lambda i: (0, 0))


def _pick_batch_tile(B, dims_p, itemsize, resident_bytes):
    """Pick the batch tile: minimize padding waste, stay inside a conservative
    VMEM budget (safe on v7x's 64 MiB/TC), prefer the larger tile on ties."""
    b_min = _round_up(B, SUBLANE)
    budget = 40 << 20
    max_dim = max(dims_p)
    candidates = [c for c in (1024, 512, 256, 128, 64, 32, 16, 8) if c <= b_min]
    if not candidates:
        candidates = [b_min]
    best_key, best_bt = None, candidates[-1]
    for bt in candidates:
        pad = _round_up(B, bt) - B
        tile_bytes = (2 * bt * dims_p[0] * itemsize      # double-buffered x tile
                      + 2 * bt * dims_p[-1] * itemsize   # double-buffered out tile
                      + 2 * bt * max_dim * 4)            # live f32 intermediates
        fits = (resident_bytes + tile_bytes) <= budget
        key = (0 if fits else 1, pad, -bt)
        if best_key is None or key < best_key:
            best_key, best_bt = key, bt
    return best_bt


# ----------------------------------------------------------------------------
# Forward: pads x, runs the single fused pallas_call, slices the logits.
# ----------------------------------------------------------------------------
def classifier_forward(padded_wb, x, *, dims, dims_p, single_buffer_weights=True):
    compute_dtype = padded_wb[0].dtype
    n_layers = len(dims) - 1
    B, K0 = x.shape
    assert K0 == dims[0]
    itemsize = jnp.dtype(compute_dtype).itemsize

    resident_bytes = sum(int(a.size) * a.dtype.itemsize for a in padded_wb)
    if not single_buffer_weights:
        resident_bytes *= 2
    bt = _pick_batch_tile(B, dims_p, itemsize, resident_bytes)
    b_pad = _round_up(B, bt)

    # Only the activations get padded/cast per call; weights were prepared once.
    x_pad = jnp.zeros((b_pad, dims_p[0]), compute_dtype)
    x_pad = x_pad.at[:B, :K0].set(x.astype(compute_dtype))

    in_specs = [pl.BlockSpec((bt, dims_p[0]), lambda i: (i, 0))]
    for li in range(n_layers):
        kp, np_ = dims_p[li], dims_p[li + 1]
        in_specs.append(_resident_spec((kp, np_), single_buffer_weights))
        in_specs.append(_resident_spec((1, np_), single_buffer_weights))

    # Explicit VMEM budget: resident weights + tiles + f32 intermediates + ~30%.
    tile_bytes = ((2 * bt * dims_p[0] + 2 * bt * dims_p[-1]) * itemsize
                  + 2 * bt * max(dims_p) * 4)
    vmem_limit = int((resident_bytes + tile_bytes) * 1.3) + (2 << 20)
    vmem_limit = max(32 << 20, min(vmem_limit, 64 << 20))

    out_pad = pl.pallas_call(
        functools.partial(_mlp_fused_kernel, n_layers=n_layers),
        out_shape=jax.ShapeDtypeStruct((b_pad, dims_p[-1]), compute_dtype),
        grid=(b_pad // bt,),
        in_specs=in_specs,
        out_specs=pl.BlockSpec((bt, dims_p[-1]), lambda i: (i, 0)),
        compiler_params=pltpu.CompilerParams(
            dimension_semantics=("parallel",),       # shard batch tiles (v7x 2 TC)
            vmem_limit_bytes=vmem_limit),
    )(x_pad, *padded_wb)

    # Strip padding and return logits in the caller's dtype.
    return out_pad[:B, :dims[-1]].astype(x.dtype)


def init_classifier_params(key, input_dim, nb_classes, hidden_units=None):
    """Layer shapes matching the PyTorch Classifier:
    dims = [input_dim, *hidden_units, nb_classes]. Weights stored (in, out)."""
    hidden_units = list(hidden_units) if hidden_units is not None else []
    dims = [input_dim] + hidden_units + [nb_classes]
    params = []
    for i in range(len(dims) - 1):
        fan_in, fan_out = dims[i], dims[i + 1]
        key, wk, bk = jax.random.split(key, 3)
        bound = 1.0 / jnp.sqrt(fan_in)
        w = jax.random.uniform(wk, (fan_in, fan_out), jnp.float32, -bound, bound)
        b = jax.random.uniform(bk, (fan_out,), jnp.float32, -bound, bound)
        params.append((w, b))
    return params


if __name__ == "__main__":
    # Small shapes consistent with the module: flat feature input -> class logits.
    batch = 8
    input_dim = 32
    hidden_units = [64, 48]
    nb_classes = 10

    key = jax.random.PRNGKey(0)
    key, xk, pk = jax.random.split(key, 3)
    x = jax.random.normal(xk, (batch, input_dim), dtype=jnp.float32)
    params = init_classifier_params(pk, input_dim, nb_classes, hidden_units)

    # One-time weight preparation (pad + bf16 cast), OUTSIDE the per-call path.
    padded_wb, dims, dims_p = prepare_params(params, compute_dtype=jnp.bfloat16)

    fwd = jax.jit(functools.partial(classifier_forward, dims=dims, dims_p=dims_p))
    try:
        logits = jax.block_until_ready(fwd(padded_wb, x))
    except Exception:
        # Fallback for jax versions that reject single-buffered weight specs.
        fwd = jax.jit(functools.partial(classifier_forward, dims=dims,
                                        dims_p=dims_p,
                                        single_buffer_weights=False))
        logits = jax.block_until_ready(fwd(padded_wb, x))

    assert logits.shape == (batch, nb_classes)
    assert logits.dtype == x.dtype

    # Reference 1: emulate the kernel's exact dtype path in plain JAX
    # (bf16 MXU inputs, f32 accumulate + bias, ReLU in bf16, bf16 writeback).
    ref = x.astype(jnp.bfloat16)
    for i, (w, b) in enumerate(params):
        y = jnp.dot(ref, w.astype(jnp.bfloat16),
                    preferred_element_type=jnp.float32) + b
        if i < len(params) - 1:
            ref = jnp.maximum(y.astype(jnp.bfloat16), 0.0)
        else:
            ref = y
    ref_bf16 = ref.astype(jnp.bfloat16).astype(jnp.float32)
    assert jnp.allclose(logits, ref_bf16, atol=2e-2, rtol=2e-2)

    # Reference 2: full-f32 MLP (semantic check; loose tol for bf16 MXU path).
    ref_f32 = x
    for i, (w, b) in enumerate(params):
        ref_f32 = ref_f32 @ w + b
        if i < len(params) - 1:
            ref_f32 = jnp.maximum(ref_f32, 0.0)
    assert jnp.allclose(logits, ref_f32, atol=6e-2, rtol=6e-2)

    print("KERNEL_OK")
</pallas_src>

<mosaic_0001>
module attributes {stable_mosaic.version = 11 : i64} {
  func.func @_mlp_fused_kernel(%arg0: i32, %arg1: memref<8x128xbf16, #tpu.memory_space<vmem>>, %arg2: memref<128x128xbf16, #tpu.memory_space<vmem>>, %arg3: memref<1x128xf32, #tpu.memory_space<vmem>>, %arg4: memref<128x128xbf16, #tpu.memory_space<vmem>>, %arg5: memref<1x128xf32, #tpu.memory_space<vmem>>, %arg6: memref<128x128xbf16, #tpu.memory_space<vmem>>, %arg7: memref<1x128xf32, #tpu.memory_space<vmem>>, %arg8: memref<8x128xbf16, #tpu.memory_space<vmem>>) attributes {dimension_semantics = [#tpu.dimension_semantics<parallel>], iteration_bounds = array<i64: 1>, scalar_prefetch = 0 : i64, scratch_operands = 0 : i64, tpu.core_type = #tpu.core_type<tc>, window_params = [{transform_indices = @transform_0, window_bounds = array<i64: 8, 128>}, {pipeline_mode = #tpu.pipeline_mode<synchronous>, transform_indices = @transform_1, window_bounds = array<i64: 128, 128>}, {pipeline_mode = #tpu.pipeline_mode<synchronous>, transform_indices = @transform_2, window_bounds = array<i64: 1, 128>}, {pipeline_mode = #tpu.pipeline_mode<synchronous>, transform_indices = @transform_3, window_bounds = array<i64: 128, 128>}, {pipeline_mode = #tpu.pipeline_mode<synchronous>, transform_indices = @transform_4, window_bounds = array<i64: 1, 128>}, {pipeline_mode = #tpu.pipeline_mode<synchronous>, transform_indices = @transform_5, window_bounds = array<i64: 128, 128>}, {pipeline_mode = #tpu.pipeline_mode<synchronous>, transform_indices = @transform_6, window_bounds = array<i64: 1, 128>}, {transform_indices = @transform_7, window_bounds = array<i64: 8, 128>}]} {
    %c0 = arith.constant 0 : index
    %c0_0 = arith.constant 0 : index
    %0 = vector.load %arg1[%c0, %c0_0] : memref<8x128xbf16, #tpu.memory_space<vmem>>, vector<8x128xbf16>
    %c0_1 = arith.constant 0 : index
    %c0_2 = arith.constant 0 : index
    %1 = vector.load %arg2[%c0_1, %c0_2] : memref<128x128xbf16, #tpu.memory_space<vmem>>, vector<128x128xbf16>
    %c0_3 = arith.constant 0 : index
    %c0_4 = arith.constant 0 : index
    %2 = vector.load %arg3[%c0_3, %c0_4] : memref<1x128xf32, #tpu.memory_space<vmem>>, vector<1x128xf32>
    %cst = arith.constant dense<0.000000e+00> : vector<8x128xf32>
    %3 = tpu.matmul %0, %1, %cst {dimension_numbers = #tpu.dot_dimension_numbers<[1], [0], [0], [1], [0, 0, 1, 1], [], []>} : vector<8x128xbf16>, vector<128x128xbf16>, vector<8x128xf32> -> vector<8x128xf32>
    %4 = vector.broadcast %2 : vector<1x128xf32> to vector<8x128xf32>
    %5 = arith.addf %3, %4 : vector<8x128xf32>
    %6 = arith.truncf %5 : vector<8x128xf32> to vector<8x128xbf16>
    %cst_5 = arith.constant 0.000000e+00 : bf16
    %7 = vector.broadcast %cst_5 : bf16 to vector<8x128xbf16>
    %8 = arith.maximumf %6, %7 : vector<8x128xbf16>
    %c0_6 = arith.constant 0 : index
    %c0_7 = arith.constant 0 : index
    %9 = vector.load %arg4[%c0_6, %c0_7] : memref<128x128xbf16, #tpu.memory_space<vmem>>, vector<128x128xbf16>
    %c0_8 = arith.constant 0 : index
    %c0_9 = arith.constant 0 : index
    %10 = vector.load %arg5[%c0_8, %c0_9] : memref<1x128xf32, #tpu.memory_space<vmem>>, vector<1x128xf32>
    %cst_10 = arith.constant dense<0.000000e+00> : vector<8x128xf32>
    %11 = tpu.matmul %8, %9, %cst_10 {dimension_numbers = #tpu.dot_dimension_numbers<[1], [0], [0], [1], [0, 0, 1, 1], [], []>} : vector<8x128xbf16>, vector<128x128xbf16>, vector<8x128xf32> -> vector<8x128xf32>
    %12 = vector.broadcast %10 : vector<1x128xf32> to vector<8x128xf32>
    %13 = arith.addf %11, %12 : vector<8x128xf32>
    %14 = arith.truncf %13 : vector<8x128xf32> to vector<8x128xbf16>
    %cst_11 = arith.constant 0.000000e+00 : bf16
    %15 = vector.broadcast %cst_11 : bf16 to vector<8x128xbf16>
    %16 = arith.maximumf %14, %15 : vector<8x128xbf16>
    %c0_12 = arith.constant 0 : index
    %c0_13 = arith.constant 0 : index
    %17 = vector.load %arg6[%c0_12, %c0_13] : memref<128x128xbf16, #tpu.memory_space<vmem>>, vector<128x128xbf16>
    %c0_14 = arith.constant 0 : index
    %c0_15 = arith.constant 0 : index
    %18 = vector.load %arg7[%c0_14, %c0_15] : memref<1x128xf32, #tpu.memory_space<vmem>>, vector<1x128xf32>
    %cst_16 = arith.constant dense<0.000000e+00> : vector<8x128xf32>
    %19 = tpu.matmul %16, %17, %cst_16 {dimension_numbers = #tpu.dot_dimension_numbers<[1], [0], [0], [1], [0, 0, 1, 1], [], []>} : vector<8x128xbf16>, vector<128x128xbf16>, vector<8x128xf32> -> vector<8x128xf32>
    %20 = vector.broadcast %18 : vector<1x128xf32> to vector<8x128xf32>
    %21 = arith.addf %19, %20 : vector<8x128xf32>
    %22 = arith.truncf %21 : vector<8x128xf32> to vector<8x128xbf16>
    %c0_17 = arith.constant 0 : index
    %c0_18 = arith.constant 0 : index
    %23 = vector.load %arg8[%c0_17, %c0_18] : memref<8x128xbf16, #tpu.memory_space<vmem>>, vector<8x128xbf16>
    tpu.vector_store %arg8[%c0_17, %c0_18], %22 {strides = array<i32>} : memref<8x128xbf16, #tpu.memory_space<vmem>>, vector<8x128xbf16>,
    return
  }
  func.func @transform_0(%arg0: i32) -> (i32, i32) {
    %c0_i32 = arith.constant 0 : i32
    %c0_i32_0 = arith.constant 0 : i32
    return %arg0, %c0_i32 : i32, i32
  }
  func.func @transform_1(%arg0: i32) -> (i32, i32) {
    %c0_i32 = arith.constant 0 : i32
    %c0_i32_0 = arith.constant 0 : i32
    %c0_i32_1 = arith.constant 0 : i32
    return %c0_i32, %c0_i32_0 : i32, i32
  }
  func.func @transform_2(%arg0: i32) -> (i32, i32) {
    %c0_i32 = arith.constant 0 : i32
    %c0_i32_0 = arith.constant 0 : i32
    %c0_i32_1 = arith.constant 0 : i32
    return %c0_i32, %c0_i32_0 : i32, i32
  }
  func.func @transform_3(%arg0: i32) -> (i32, i32) {
    %c0_i32 = arith.constant 0 : i32
    %c0_i32_0 = arith.constant 0 : i32
    %c0_i32_1 = arith.constant 0 : i32
    return %c0_i32, %c0_i32_0 : i32, i32
  }
  func.func @transform_4(%arg0: i32) -> (i32, i32) {
    %c0_i32 = arith.constant 0 : i32
    %c0_i32_0 = arith.constant 0 : i32
    %c0_i32_1 = arith.constant 0 : i32
    return %c0_i32, %c0_i32_0 : i32, i32
  }
  func.func @transform_5(%arg0: i32) -> (i32, i32) {
    %c0_i32 = arith.constant 0 : i32
    %c0_i32_0 = arith.constant 0 : i32
    %c0_i32_1 = arith.constant 0 : i32
    return %c0_i32, %c0_i32_0 : i32, i32
  }
  func.func @transform_6(%arg0: i32) -> (i32, i32) {
    %c0_i32 = arith.constant 0 : i32
    %c0_i32_0 = arith.constant 0 : i32
    %c0_i32_1 = arith.constant 0 : i32
    return %c0_i32, %c0_i32_0 : i32, i32
  }
  func.func @transform_7(%arg0: i32) -> (i32, i32) {
    %c0_i32 = arith.constant 0 : i32
    %c0_i32_0 = arith.constant 0 : i32
    return %arg0, %c0_i32 : i32, i32
  }
}

module attributes {stable_mosaic.version = 11 : i64} {
  func.func @_mlp_fused_kernel(%arg0: i32, %arg1: memref<8x128xbf16, #tpu.memory_space<vmem>>, %arg2: memref<128x128xbf16, #tpu.memory_space<vmem>>, %arg3: memref<1x128xf32, #tpu.memory_space<vmem>>, %arg4: memref<128x128xbf16, #tpu.memory_space<vmem>>, %arg5: memref<1x128xf32, #tpu.memory_space<vmem>>, %arg6: memref<128x128xbf16, #tpu.memory_space<vmem>>, %arg7: memref<1x128xf32, #tpu.memory_space<vmem>>, %arg8: memref<8x128xbf16, #tpu.memory_space<vmem>>) attributes {dimension_semantics = [#tpu.dimension_semantics<parallel>], iteration_bounds = array<i64: 1>, scalar_prefetch = 0 : i64, scratch_operands = 0 : i64, tpu.core_type = #tpu.core_type<tc>, window_params = [{transform_indices = @transform_0, window_bounds = array<i64: 8, 128>}, {pipeline_mode = #tpu.pipeline_mode<synchronous>, transform_indices = @transform_1, window_bounds = array<i64: 128, 128>}, {pipeline_mode = #tpu.pipeline_mode<synchronous>, transform_indices = @transform_2, window_bounds = array<i64: 1, 128>}, {pipeline_mode = #tpu.pipeline_mode<synchronous>, transform_indices = @transform_3, window_bounds = array<i64: 128, 128>}, {pipeline_mode = #tpu.pipeline_mode<synchronous>, transform_indices = @transform_4, window_bounds = array<i64: 1, 128>}, {pipeline_mode = #tpu.pipeline_mode<synchronous>, transform_indices = @transform_5, window_bounds = array<i64: 128, 128>}, {pipeline_mode = #tpu.pipeline_mode<synchronous>, transform_indices = @transform_6, window_bounds = array<i64: 1, 128>}, {transform_indices = @transform_7, window_bounds = array<i64: 8, 128>}]} {
    %c0 = arith.constant 0 : index
    %c0_0 = arith.constant 0 : index
    %0 = vector.load %arg1[%c0, %c0_0] : memref<8x128xbf16, #tpu.memory_space<vmem>>, vector<8x128xbf16>
    %c0_1 = arith.constant 0 : index
    %c0_2 = arith.constant 0 : index
    %1 = vector.load %arg2[%c0_1, %c0_2] : memref<128x128xbf16, #tpu.memory_space<vmem>>, vector<128x128xbf16>
    %c0_3 = arith.constant 0 : index
    %c0_4 = arith.constant 0 : index
    %2 = vector.load %arg3[%c0_3, %c0_4] : memref<1x128xf32, #tpu.memory_space<vmem>>, vector<1x128xf32>
    %cst = arith.constant dense<0.000000e+00> : vector<8x128xf32>
    %3 = tpu.matmul %0, %1, %cst {dimension_numbers = #tpu.dot_dimension_numbers<[1], [0], [0], [1], [0, 0, 1, 1], [], []>} : vector<8x128xbf16>, vector<128x128xbf16>, vector<8x128xf32> -> vector<8x128xf32>
    %4 = vector.broadcast %2 : vector<1x128xf32> to vector<8x128xf32>
    %5 = arith.addf %3, %4 : vector<8x128xf32>
    %6 = arith.truncf %5 : vector<8x128xf32> to vector<8x128xbf16>
    %cst_5 = arith.constant 0.000000e+00 : bf16
    %7 = vector.broadcast %cst_5 : bf16 to vector<8x128xbf16>
    %8 = arith.maximumf %6, %7 : vector<8x128xbf16>
    %c0_6 = arith.constant 0 : index
    %c0_7 = arith.constant 0 : index
    %9 = vector.load %arg4[%c0_6, %c0_7] : memref<128x128xbf16, #tpu.memory_space<vmem>>, vector<128x128xbf16>
    %c0_8 = arith.constant 0 : index
    %c0_9 = arith.constant 0 : index
    %10 = vector.load %arg5[%c0_8, %c0_9] : memref<1x128xf32, #tpu.memory_space<vmem>>, vector<1x128xf32>
    %cst_10 = arith.constant dense<0.000000e+00> : vector<8x128xf32>
    %11 = tpu.matmul %8, %9, %cst_10 {dimension_numbers = #tpu.dot_dimension_numbers<[1], [0], [0], [1], [0, 0, 1, 1], [], []>} : vector<8x128xbf16>, vector<128x128xbf16>, vector<8x128xf32> -> vector<8x128xf32>
    %12 = vector.broadcast %10 : vector<1x128xf32> to vector<8x128xf32>
    %13 = arith.addf %11, %12 : vector<8x128xf32>
    %14 = arith.truncf %13 : vector<8x128xf32> to vector<8x128xbf16>
    %cst_11 = arith.constant 0.000000e+00 : bf16
    %15 = vector.broadcast %cst_11 : bf16 to vector<8x128xbf16>
    %16 = arith.maximumf %14, %15 : vector<8x128xbf16>
    %c0_12 = arith.constant 0 : index
    %c0_13 = arith.constant 0 : index
    %17 = vector.load %arg6[%c0_12, %c0_13] : memref<128x128xbf16, #tpu.memory_space<vmem>>, vector<128x128xbf16>
    %c0_14 = arith.constant 0 : index
    %c0_15 = arith.constant 0 : index
    %18 = vector.load %arg7[%c0_14, %c0_15] : memref<1x128xf32, #tpu.memory_space<vmem>>, vector<1x128xf32>
    %cst_16 = arith.constant dense<0.000000e+00> : vector<8x128xf32>
    %19 = tpu.matmul %16, %17, %cst_16 {dimension_numbers = #tpu.dot_dimension_numbers<[1], [0], [0], [1], [0, 0, 1, 1], [], []>} : vector<8x128xbf16>, vector<128x128xbf16>, vector<8x128xf32> -> vector<8x128xf32>
    %20 = vector.broadcast %18 : vector<1x128xf32> to vector<8x128xf32>
    %21 = arith.addf %19, %20 : vector<8x128xf32>
    %22 = arith.truncf %21 : vector<8x128xf32> to vector<8x128xbf16>
    %c0_17 = arith.constant 0 : index
    %c0_18 = arith.constant 0 : index
    %23 = vector.load %arg8[%c0_17, %c0_18] : memref<8x128xbf16, #tpu.memory_space<vmem>>, vector<8x128xbf16>
    tpu.vector_store %arg8[%c0_17, %c0_18], %22 {strides = array<i32>} : memref<8x128xbf16, #tpu.memory_space<vmem>>, vector<8x128xbf16>,
    return
  }
  func.func @transform_0(%arg0: i32) -> (i32, i32) {
    %c0_i32 = arith.constant 0 : i32
    %c0_i32_0 = arith.constant 0 : i32
    return %arg0, %c0_i32 : i32, i32
  }
  func.func @transform_1(%arg0: i32) -> (i32, i32) {
    %c0_i32 = arith.constant 0 : i32
    %c0_i32_0 = arith.constant 0 : i32
    %c0_i32_1 = arith.constant 0 : i32
    return %c0_i32, %c0_i32_0 : i32, i32
  }
  func.func @transform_2(%arg0: i32) -> (i32, i32) {
    %c0_i32 = arith.constant 0 : i32
    %c0_i32_0 = arith.constant 0 : i32
    %c0_i32_1 = arith.constant 0 : i32
    return %c0_i32, %c0_i32_0 : i32, i32
  }
  func.func @transform_3(%arg0: i32) -> (i32, i32) {
    %c0_i32 = arith.constant 0 : i32
    %c0_i32_0 = arith.constant 0 : i32
    %c0_i32_1 = arith.constant 0 : i32
    return %c0_i32, %c0_i32_0 : i32, i32
  }
  func.func @transform_4(%arg0: i32) -> (i32, i32) {
    %c0_i32 = arith.constant 0 : i32
    %c0_i32_0 = arith.constant 0 : i32
    %c0_i32_1 = arith.constant 0 : i32
    return %c0_i32, %c0_i32_0 : i32, i32
  }
  func.func @transform_5(%arg0: i32) -> (i32, i32) {
    %c0_i32 = arith.constant 0 : i32
    %c0_i32_0 = arith.constant 0 : i32
    %c0_i32_1 = arith.constant 0 : i32
    return %c0_i32, %c0_i32_0 : i32, i32
  }
  func.func @transform_6(%arg0: i32) -> (i32, i32) {
    %c0_i32 = arith.constant 0 : i32
    %c0_i32_0 = arith.constant 0 : i32
    %c0_i32_1 = arith.constant 0 : i32
    return %c0_i32, %c0_i32_0 : i32, i32
  }
  func.func @transform_7(%arg0: i32) -> (i32, i32) {
    %c0_i32 = arith.constant 0 : i32
    %c0_i32_0 = arith.constant 0 : i32
    return %arg0, %c0_i32 : i32, i32
  }
}

</mosaic_0001>

<bundles_post_ra>
// kernel: classifier_forward.1
= control target key start
LH: loop header
LB: loop body
LE: loop exit
PB: predicated region body
PF: predicated region fallthrough
CT: control target
= control target key end

     0   :  { %12 = vsyncpa [#allocation3], 0  ;;  %s775_s0 = inlined_call_operand.vmem [shape: bf16[8,128], index: 0, kind: input, shape index: {}]   ;;  %s776_s1 = inlined_call_operand.hbm [shape: bf16[128,128], index: 1, kind: input, shape index: {}]   ;;  %s777_s2 = inlined_call_operand.vmem [shape: f32[1,128], index: 2, kind: input, shape index: {}]   ;;  %s778_s3 = inlined_call_operand.hbm [shape: bf16[128,128], index: 3, kind: input, shape index: {}]   ;;  %s779_s4 = inlined_call_operand.vmem [shape: f32[1,128], index: 4, kind: input, shape index: {}]   ;;  %s780_s5 = inlined_call_operand.hbm [shape: bf16[128,128], index: 5, kind: input, shape index: {}]   ;;  %s781_s6 = inlined_call_operand.vmem [shape: f32[1,128], index: 6, kind: input, shape index: {}]   ;;  %s782_s7 = inlined_call_operand.vmem [shape: bf16[8,128], index: 7, kind: output, shape index: {}]  }
   0x1   :  { %13 = vsyncpa [#allocation5], 0  ;;  %s630_s24 = smov [#allocation4]   ;;  %s631_s26 = smov [#allocation2]  }
   0x2   :  { %s35_s25 = sshll.u32 %s630_s24, 4  ;;  %s21_s27 = sshll.u32 %s631_s26, 4  ;;  %s36_s25 = int_to_ptr.vmem [resolvable:$true] %s35_s25  ;;  %s678_s27 = int_to_ptr.vmem [resolvable:$true] %s21_s27 }
   0x3   :  { %s560_s30 = scalar_lea.hbm %s778_s3, 1024 }
   0x4   :  { %p561_p0 = scmp.ne.s32.totalorder %s778_s3, %s560_s30  ;;  %p564_p1 = scmp.lt.u32.totalorder %s560_s30, %s778_s3 }
   0x6   :  { %p566_p2 = pnand %p564_p1, %p561_p0 }
   0x8   :  { %569 = shalt.err (!%p566_p2)
}
   0x9   :  { %s570_s12 = scalar_lea.vmem %s36_s25, 1024  ;;  %p575_p4 = scmp.lt.s32.totalorder %s36_s25, %s36_s25 }
   0xa   :  { %p571_p3 = scmp.ne.s32.totalorder %s36_s25, %s570_s12  ;;  %p576_p5 = scmp.lt.s32.totalorder %s570_s12, %s570_s12 }
   0xc   :  { %p577_p6 = por %p576_p5, %p575_p4 }
   0xe   :  { %p578_p7 = pnand %p577_p6, %p571_p3 }
  0x10   :  { %581 = shalt.err (!%p578_p7)
}
  0x11   :  { %s632_s13 = smov 64   ;;  %s633_s14 = smov 4  }
  0x12   :  { %41 = dma.hbm_to_vmem [thread:$0]  %s778_s3, 1024, %s36_s25, [#allocation5], %s632_s13, %s632_s13, %s633_s14  }
  0x13   :  { %s582_s19 = scalar_lea.hbm %s776_s1, 1024 }
  0x14   :  { %p583_p8 = scmp.ne.s32.totalorder %s776_s1, %s582_s19  ;;  %p586_p9 = scmp.lt.u32.totalorder %s582_s19, %s776_s1 }
  0x16   :  { %p588_p10 = pnand %p586_p9, %p583_p8 }
  0x18   :  { %591 = shalt.err (!%p588_p10)
}
  0x19   :  { %s592_s24 = scalar_lea.vmem %s678_s27, 1024  ;;  %p597_p12 = scmp.lt.s32.totalorder %s678_s27, %s678_s27 }
  0x1a   :  { %p593_p11 = scmp.ne.s32.totalorder %s678_s27, %s592_s24  ;;  %p598_p13 = scmp.lt.s32.totalorder %s592_s24, %s592_s24 }
  0x1c   :  { %p599_p0 = por %p598_p13, %p597_p12 }
  0x1e   :  { %p600_p1 = pnand %p599_p0, %p593_p11 }
  0x20   :  { %603 = shalt.err (!%p600_p1)
}
  0x21   :  { %27 = dma.hbm_to_vmem [thread:$0]  %s776_s1, 1024, %s678_s27, [#allocation3], %s632_s13, %s632_s13, %s633_s14  }
  0x22   :  { %s634_s26 = smov [#allocation6]   ;;  %s604_s8 = scalar_lea.hbm %s780_s5, 1024 }
  0x23   :  { %s49_s28 = sshll.u32 %s634_s26, 4  ;;  %p605_p2 = scmp.ne.s32.totalorder %s780_s5, %s604_s8  ;;  %s50_s28 = int_to_ptr.vmem [resolvable:$true] %s49_s28 }
  0x24   :  { %p608_p3 = scmp.lt.u32.totalorder %s604_s8, %s780_s5 }
  0x26   :  { %p610_p4 = pnand %p608_p3, %p605_p2 }
  0x28   :  { %613 = shalt.err (!%p610_p4)
}
  0x29   :  { %s614_s15 = scalar_lea.vmem %s50_s28, 1024  ;;  %p619_p6 = scmp.lt.s32.totalorder %s50_s28, %s50_s28 }
  0x2a   :  { %p615_p5 = scmp.ne.s32.totalorder %s50_s28, %s614_s15  ;;  %p620_p7 = scmp.lt.s32.totalorder %s614_s15, %s614_s15 }
  0x2c   :  { %p621_p8 = por %p620_p7, %p619_p6 }
  0x2e   :  { %p622_p9 = pnand %p621_p8, %p615_p5 }
  0x30   :  { %625 = shalt.err (!%p622_p9)
}
  0x31   :  { %55 = dma.hbm_to_vmem [thread:$0]  %s780_s5, 1024, %s50_s28, [#allocation5], %s632_s13, %s632_s13, %s633_s14  }
  0x32   :  { %626 = dma.done.wait [#allocation3], 1024  }
  0x33   :  { %627 = vsyncadd [#allocation3], 4294966272 }
  0x34   :  { %628 = dma.done.wait [#allocation5], 2048  }
  0x35   :  { %629 = vsyncadd [#allocation5], 4294965248  ;;  %v635_v0 = vmov 0.0   ;;  %vm636_vm0 = vmmov 0   ;;  %v536_v1 = vld [vmem:[#allocation2] sm:$0xff]   ;;  %v537_v2 = vld [vmem:[#allocation2 + $0x8] sm:$0xff]  }
  0x36   :  { %468 = vmatprep.subr.bf16.mxu0 %v635_v0  ;;  %484 = vmatprep.mubr.msk.bf16.mxu0 %vm636_vm0, %v635_v0  ;;  %v538_v3 = vld [vmem:[#allocation2 + $0x10] sm:$0xff]   ;;  %v544_v4 = vld [vmem:[#allocation4] sm:$0xff]   ;;  %v539_v5 = vld [vmem:[#allocation2 + $0x18] sm:$0xff]   ;;  %v637_v31 = vmov 0  }
  0x37   :  { %488 = vmatprep.subr.bf16.mxu1 %v635_v0  ;;  %504 = vmatprep.mubr.msk.bf16.mxu1 %vm636_vm0, %v635_v0  ;;  %v545_v6 = vld [vmem:[#allocation4 + $0x8] sm:$0xff]   ;;  %v540_v7 = vld [vmem:[#allocation2 + $0x20] sm:$0xff]   ;;  %v546_v8 = vld [vmem:[#allocation4 + $0x10] sm:$0xff]  }
  0x38   :  { %469 = vmatpush3.bf16.msra.mxu0 %v536_v1  ;;  %489 = vmatpush3.bf16.msra.mxu1 %v544_v4  ;;  %v541_v9 = vld [vmem:[#allocation2 + $0x28] sm:$0xff]   ;;  %v547_v10 = vld [vmem:[#allocation4 + $0x18] sm:$0xff]   ;;  %v542_v11 = vld [vmem:[#allocation2 + $0x30] sm:$0xff]  }
  0x39   :  { %470 = vmatprep.subr.bf16.mxu0 %v635_v0  ;;  %490 = vmatprep.subr.bf16.mxu1 %v635_v0  ;;  %v548_v12 = vld [vmem:[#allocation4 + $0x20] sm:$0xff]   ;;  %v543_v13 = vld [vmem:[#allocation2 + $0x38] sm:$0xff]   ;;  %v549_v14 = vld [vmem:[#allocation4 + $0x28] sm:$0xff]  }
  0x3a   :  { %v68_v15 = vld [vmem:[%s775_s0] sm:$0xf]  ;;  %v550_v16 = vld [vmem:[#allocation4 + $0x30] sm:$0xff]   ;;  %v551_v17 = vld [vmem:[#allocation4 + $0x38] sm:$0xff]  }
  0x3b   :  { %v552_v18 = vld [vmem:[#allocation6] sm:$0xff]   ;;  %v553_v19 = vld [vmem:[#allocation6 + $0x8] sm:$0xff]   ;;  %v554_v20 = vld [vmem:[#allocation6 + $0x10] sm:$0xff]  }
  0x3c   :  { %471 = vmatpush3.bf16.msra.mxu0 %v537_v2  ;;  %491 = vmatpush3.bf16.msra.mxu1 %v545_v6  ;;  %v555_v21 = vld [vmem:[#allocation6 + $0x18] sm:$0xff]   ;;  %v556_v22 = vld [vmem:[#allocation6 + $0x20] sm:$0xff]   ;;  %v557_v23 = vld [vmem:[#allocation6 + $0x28] sm:$0xff]  }
  0x3d   :  { %472 = vmatprep.subr.bf16.mxu0 %v635_v0  ;;  %492 = vmatprep.subr.bf16.mxu1 %v635_v0  ;;  %v414_v24 = vld [vmem:[%s777_s2] ss:$0 sm:$0xff]  ;;  %v558_v33 = vld [vmem:[#allocation6 + $0x30] sm:$0xff]   ;;  %v559_v34 = vld [vmem:[#allocation6 + $0x38] sm:$0xff]  }
  0x3e   :  { %v423_v35 = vld [vmem:[%s779_s4] ss:$0 sm:$0xff] }
  0x3f   :  { %v432_v43 = vld [vmem:[%s781_s6] ss:$0 sm:$0xff] }
  0x40   :  { %473 = vmatpush3.bf16.msra.mxu0 %v538_v3  ;;  %493 = vmatpush3.bf16.msra.mxu1 %v546_v8 }
  0x41   :  { %474 = vmatprep.subr.bf16.mxu0 %v635_v0  ;;  %494 = vmatprep.subr.bf16.mxu1 %v635_v0 }
  0x44   :  { %475 = vmatpush3.bf16.msra.mxu0 %v539_v5  ;;  %495 = vmatpush3.bf16.msra.mxu1 %v547_v10 }
  0x45   :  { %476 = vmatprep.subr.bf16.mxu0 %v635_v0  ;;  %496 = vmatprep.subr.bf16.mxu1 %v635_v0 }
  0x48   :  { %477 = vmatpush3.bf16.msra.mxu0 %v540_v7  ;;  %497 = vmatpush3.bf16.msra.mxu1 %v548_v12 }
  0x49   :  { %478 = vmatprep.subr.bf16.mxu0 %v635_v0  ;;  %498 = vmatprep.subr.bf16.mxu1 %v635_v0 }
  0x4c   :  { %479 = vmatpush3.bf16.msra.mxu0 %v541_v9  ;;  %499 = vmatpush3.bf16.msra.mxu1 %v549_v14 }
  0x4d   :  { %480 = vmatprep.subr.bf16.mxu0 %v635_v0  ;;  %500 = vmatprep.subr.bf16.mxu1 %v635_v0 }
  0x50   :  { %481 = vmatpush3.bf16.msra.mxu0 %v542_v11  ;;  %501 = vmatpush3.bf16.msra.mxu1 %v550_v16 }
  0x51   :  { %482 = vmatprep.subr.bf16.mxu0 %v635_v0  ;;  %502 = vmatprep.subr.bf16.mxu1 %v635_v0 }
  0x54   :  { %483 = vmatpush3.bf16.msra.mxu0 %v543_v13  ;;  %503 = vmatpush3.bf16.msra.mxu1 %v551_v17 }
  0x55   :  { %508 = vmatprep.subr.bf16.mxu0 %v635_v0 }
  0x57   :  { %485 = vmatmul.mubr.bf16.vlgmr.msra.gmra.mrb[0].mxu0 %v68_v15 }
  0x58   :  { %524 = vmatprep.mubr.msk.bf16.mxu0 %vm636_vm0, %v635_v0  ;;  %509 = vmatpush3.bf16.msra.mxu0 %v552_v18 }
  0x59   :  { %510 = vmatprep.subr.bf16.mxu0 %v635_v0 }
  0x5c   :  { %511 = vmatpush3.bf16.msra.mxu0 %v553_v19 }
  0x5d   :  { %512 = vmatprep.subr.bf16.mxu0 %v635_v0 }
  0x60   :  { %513 = vmatpush3.bf16.msra.mxu0 %v554_v20 }
  0x61   :  { %514 = vmatprep.subr.bf16.mxu0 %v635_v0 }
  0x64   :  { %515 = vmatpush3.bf16.msra.mxu0 %v555_v21 }
  0x65   :  { %516 = vmatprep.subr.bf16.mxu0 %v635_v0 }
  0x68   :  { %517 = vmatpush3.bf16.msra.mxu0 %v556_v22 }
  0x69   :  { %518 = vmatprep.subr.bf16.mxu0 %v635_v0 }
  0x6c   :  { %519 = vmatpush3.bf16.msra.mxu0 %v557_v23 }
  0x6d   :  { %520 = vmatprep.subr.bf16.mxu0 %v635_v0 }
  0x70   :  { %521 = vmatpush3.bf16.msra.mxu0 %v558_v33 }
  0x71   :  { %522 = vmatprep.subr.bf16.mxu0 %v635_v0 }
  0x74   :  { %523 = vmatpush3.bf16.msra.mxu0 %v559_v34 }
 0x12a   :  { %v174_v25 = vpop.f32.mrb[0].mxu0 }
 0x12b   :  { %v175_v26 = vadd.f32 %v414_v24, %v174_v25  ;;  %v486_v27 = vpop.f32.mrb[1].mxu0 }
 0x12c   :  { %v177_v28 = vpop.f32.mrb[2].mxu0 }
 0x12d   :  { %v180_v29 = vpack.c.bf16 %v175_v26, %v175_v26  ;;  %v487_v30 = vpop.f32.mrb[3].mxu0 }
 0x12f   :  { %v181_v32 = vmax.bf16 %v637_v31, %v180_v29 }
 0x131   :  { %505 = vmatmul.mubr.bf16.vlgmr.msra.gmra.mrb[0].mxu1 %v181_v32 }
 0x204   :  { %v287_v36 = vpop.f32.mrb[0].mxu1 }
 0x205   :  { %v288_v37 = vadd.f32 %v423_v35, %v287_v36  ;;  %v506_v38 = vpop.f32.mrb[1].mxu1 }
 0x206   :  { %v290_v39 = vpop.f32.mrb[2].mxu1 }
 0x207   :  { %v293_v40 = vpack.c.bf16 %v288_v37, %v288_v37  ;;  %v507_v41 = vpop.f32.mrb[3].mxu1 }
 0x209   :  { %v294_v42 = vmax.bf16 %v637_v31, %v293_v40 }
 0x20b   :  { %525 = vmatmul.mubr.bf16.vlgmr.msra.gmra.mrb[4].mxu0 %v294_v42 }
 0x2de   :  { %v400_v44 = vpop.f32.mrb[4].mxu0 }
 0x2df   :  { %v401_v45 = vadd.f32 %v432_v43, %v400_v44  ;;  %v526_v46 = vpop.f32.mrb[5].mxu0 }
 0x2e0   :  { %v403_v47 = vpop.f32.mrb[6].mxu0 }
 0x2e1   :  { %v406_v48 = vpack.c.bf16 %v401_v45, %v401_v45  ;;  %v527_v49 = vpop.f32.mrb[7].mxu0 }
 0x2e3   :  { %407 = vst [vmem:[%s782_s7] sm:$0xf] %v406_v48 }
 0x2e4   :  { %412 = vsyncpa [#allocation3], 1 }
 0x2e5   :  { %413 = vsyncpa [#allocation5], 1 }

// kernel: classifier_forward.1
= control target key start
LH: loop header
LB: loop body
LE: loop exit
PB: predicated region body
PF: predicated region fallthrough
CT: control target
= control target key end

     0   :  { %12 = vsyncpa [#allocation3], 0  ;;  %s775_s0 = inlined_call_operand.vmem [shape: bf16[8,128], index: 0, kind: input, shape index: {}]   ;;  %s776_s1 = inlined_call_operand.hbm [shape: bf16[128,128], index: 1, kind: input, shape index: {}]   ;;  %s777_s2 = inlined_call_operand.vmem [shape: f32[1,128], index: 2, kind: input, shape index: {}]   ;;  %s778_s3 = inlined_call_operand.hbm [shape: bf16[128,128], index: 3, kind: input, shape index: {}]   ;;  %s779_s4 = inlined_call_operand.vmem [shape: f32[1,128], index: 4, kind: input, shape index: {}]   ;;  %s780_s5 = inlined_call_operand.hbm [shape: bf16[128,128], index: 5, kind: input, shape index: {}]   ;;  %s781_s6 = inlined_call_operand.vmem [shape: f32[1,128], index: 6, kind: input, shape index: {}]   ;;  %s782_s7 = inlined_call_operand.vmem [shape: bf16[8,128], index: 7, kind: output, shape index: {}]  }
   0x1   :  { %13 = vsyncpa [#allocation5], 0  ;;  %s630_s24 = smov [#allocation4]   ;;  %s631_s26 = smov [#allocation2]  }
   0x2   :  { %s35_s25 = sshll.u32 %s630_s24, 4  ;;  %s21_s27 = sshll.u32 %s631_s26, 4  ;;  %s36_s25 = int_to_ptr.vmem [resolvable:$true] %s35_s25  ;;  %s678_s27 = int_to_ptr.vmem [resolvable:$true] %s21_s27 }
   0x3   :  { %s560_s30 = scalar_lea.hbm %s778_s3, 1024 }
   0x4   :  { %p561_p0 = scmp.ne.s32.totalorder %s778_s3, %s560_s30  ;;  %p564_p1 = scmp.lt.u32.totalorder %s560_s30, %s778_s3 }
   0x6   :  { %p566_p2 = pnand %p564_p1, %p561_p0 }
   0x8   :  { %569 = shalt.err (!%p566_p2)
}
   0x9   :  { %s570_s12 = scalar_lea.vmem %s36_s25, 1024  ;;  %p575_p4 = scmp.lt.s32.totalorder %s36_s25, %s36_s25 }
   0xa   :  { %p571_p3 = scmp.ne.s32.totalorder %s36_s25, %s570_s12  ;;  %p576_p5 = scmp.lt.s32.totalorder %s570_s12, %s570_s12 }
   0xc   :  { %p577_p6 = por %p576_p5, %p575_p4 }
   0xe   :  { %p578_p7 = pnand %p577_p6, %p571_p3 }
  0x10   :  { %581 = shalt.err (!%p578_p7)
}
  0x11   :  { %s632_s13 = smov 64   ;;  %s633_s14 = smov 4  }
  0x12   :  { %41 = dma.hbm_to_vmem [thread:$0]  %s778_s3, 1024, %s36_s25, [#allocation5], %s632_s13, %s632_s13, %s633_s14  }
  0x13   :  { %s582_s19 = scalar_lea.hbm %s776_s1, 1024 }
  0x14   :  { %p583_p8 = scmp.ne.s32.totalorder %s776_s1, %s582_s19  ;;  %p586_p9 = scmp.lt.u32.totalorder %s582_s19, %s776_s1 }
  0x16   :  { %p588_p10 = pnand %p586_p9, %p583_p8 }
  0x18   :  { %591 = shalt.err (!%p588_p10)
}
  0x19   :  { %s592_s24 = scalar_lea.vmem %s678_s27, 1024  ;;  %p597_p12 = scmp.lt.s32.totalorder %s678_s27, %s678_s27 }
  0x1a   :  { %p593_p11 = scmp.ne.s32.totalorder %s678_s27, %s592_s24  ;;  %p598_p13 = scmp.lt.s32.totalorder %s592_s24, %s592_s24 }
  0x1c   :  { %p599_p0 = por %p598_p13, %p597_p12 }
  0x1e   :  { %p600_p1 = pnand %p599_p0, %p593_p11 }
  0x20   :  { %603 = shalt.err (!%p600_p1)
}
  0x21   :  { %27 = dma.hbm_to_vmem [thread:$0]  %s776_s1, 1024, %s678_s27, [#allocation3], %s632_s13, %s632_s13, %s633_s14  }
  0x22   :  { %s634_s26 = smov [#allocation6]   ;;  %s604_s8 = scalar_lea.hbm %s780_s5, 1024 }
  0x23   :  { %s49_s28 = sshll.u32 %s634_s26, 4  ;;  %p605_p2 = scmp.ne.s32.totalorder %s780_s5, %s604_s8  ;;  %s50_s28 = int_to_ptr.vmem [resolvable:$true] %s49_s28 }
  0x24   :  { %p608_p3 = scmp.lt.u32.totalorder %s604_s8, %s780_s5 }
  0x26   :  { %p610_p4 = pnand %p608_p3, %p605_p2 }
  0x28   :  { %613 = shalt.err (!%p610_p4)
}
  0x29   :  { %s614_s15 = scalar_lea.vmem %s50_s28, 1024  ;;  %p619_p6 = scmp.lt.s32.totalorder %s50_s28, %s50_s28 }
  0x2a   :  { %p615_p5 = scmp.ne.s32.totalorder %s50_s28, %s614_s15  ;;  %p620_p7 = scmp.lt.s32.totalorder %s614_s15, %s614_s15 }
  0x2c   :  { %p621_p8 = por %p620_p7, %p619_p6 }
  0x2e   :  { %p622_p9 = pnand %p621_p8, %p615_p5 }
  0x30   :  { %625 = shalt.err (!%p622_p9)
}
  0x31   :  { %55 = dma.hbm_to_vmem [thread:$0]  %s780_s5, 1024, %s50_s28, [#allocation5], %s632_s13, %s632_s13, %s633_s14  }
  0x32   :  { %626 = dma.done.wait [#allocation3], 1024  }
  0x33   :  { %627 = vsyncadd [#allocation3], 4294966272 }
  0x34   :  { %628 = dma.done.wait [#allocation5], 2048  }
  0x35   :  { %629 = vsyncadd [#allocation5], 4294965248  ;;  %v635_v0 = vmov 0.0   ;;  %vm636_vm0 = vmmov 0   ;;  %v536_v1 = vld [vmem:[#allocation2] sm:$0xff]   ;;  %v537_v2 = vld [vmem:[#allocation2 + $0x8] sm:$0xff]  }
  0x36   :  { %468 = vmatprep.subr.bf16.mxu0 %v635_v0  ;;  %484 = vmatprep.mubr.msk.bf16.mxu0 %vm636_vm0, %v635_v0  ;;  %v538_v3 = vld [vmem:[#allocation2 + $0x10] sm:$0xff]   ;;  %v544_v4 = vld [vmem:[#allocation4] sm:$0xff]   ;;  %v539_v5 = vld [vmem:[#allocation2 + $0x18] sm:$0xff]   ;;  %v637_v31 = vmov 0  }
  0x37   :  { %488 = vmatprep.subr.bf16.mxu1 %v635_v0  ;;  %504 = vmatprep.mubr.msk.bf16.mxu1 %vm636_vm0, %v635_v0  ;;  %v545_v6 = vld [vmem:[#allocation4 + $0x8] sm:$0xff]   ;;  %v540_v7 = vld [vmem:[#allocation2 + $0x20] sm:$0xff]   ;;  %v546_v8 = vld [vmem:[#allocation4 + $0x10] sm:$0xff]  }
  0x38   :  { %469 = vmatpush3.bf16.msra.mxu0 %v536_v1  ;;  %489 = vmatpush3.bf16.msra.mxu1 %v544_v4  ;;  %v541_v9 = vld [vmem:[#allocation2 + $0x28] sm:$0xff]   ;;  %v547_v10 = vld [vmem:[#allocation4 + $0x18] sm:$0xff]   ;;  %v542_v11 = vld [vmem:[#allocation2 + $0x30] sm:$0xff]  }
  0x39   :  { %470 = vmatprep.subr.bf16.mxu0 %v635_v0  ;;  %490 = vmatprep.subr.bf16.mxu1 %v635_v0  ;;  %v548_v12 = vld [vmem:[#allocation4 + $0x20] sm:$0xff]   ;;  %v543_v13 = vld [vmem:[#allocation2 + $0x38] sm:$0xff]   ;;  %v549_v14 = vld [vmem:[#allocation4 + $0x28] sm:$0xff]  }
  0x3a   :  { %v68_v15 = vld [vmem:[%s775_s0] sm:$0xf]  ;;  %v550_v16 = vld [vmem:[#allocation4 + $0x30] sm:$0xff]   ;;  %v551_v17 = vld [vmem:[#allocation4 + $0x38] sm:$0xff]  }
  0x3b   :  { %v552_v18 = vld [vmem:[#allocation6] sm:$0xff]   ;;  %v553_v19 = vld [vmem:[#allocation6 + $0x8] sm:$0xff]   ;;  %v554_v20 = vld [vmem:[#allocation6 + $0x10] sm:$0xff]  }
  0x3c   :  { %471 = vmatpush3.bf16.msra.mxu0 %v537_v2  ;;  %491 = vmatpush3.bf16.msra.mxu1 %v545_v6  ;;  %v555_v21 = vld [vmem:[#allocation6 + $0x18] sm:$0xff]   ;;  %v556_v22 = vld [vmem:[#allocation6 + $0x20] sm:$0xff]   ;;  %v557_v23 = vld [vmem:[#allocation6 + $0x28] sm:$0xff]  }
  0x3d   :  { %472 = vmatprep.subr.bf16.mxu0 %v635_v0  ;;  %492 = vmatprep.subr.bf16.mxu1 %v635_v0  ;;  %v414_v24 = vld [vmem:[%s777_s2] ss:$0 sm:$0xff]  ;;  %v558_v33 = vld [vmem:[#allocation6 + $0x30] sm:$0xff]   ;;  %v559_v34 = vld [vmem:[#allocation6 + $0x38] sm:$0xff]  }
  0x3e   :  { %v423_v35 = vld [vmem:[%s779_s4] ss:$0 sm:$0xff] }
  0x3f   :  { %v432_v43 = vld [vmem:[%s781_s6] ss:$0 sm:$0xff] }
  0x40   :  { %473 = vmatpush3.bf16.msra.mxu0 %v538_v3  ;;  %493 = vmatpush3.bf16.msra.mxu1 %v546_v8 }
  0x41   :  { %474 = vmatprep.subr.bf16.mxu0 %v635_v0  ;;  %494 = vmatprep.subr.bf16.mxu1 %v635_v0 }
  0x44   :  { %475 = vmatpush3.bf16.msra.mxu0 %v539_v5  ;;  %495 = vmatpush3.bf16.msra.mxu1 %v547_v10 }
  0x45   :  { %476 = vmatprep.subr.bf16.mxu0 %v635_v0  ;;  %496 = vmatprep.subr.bf16.mxu1 %v635_v0 }
  0x48   :  { %477 = vmatpush3.bf16.msra.mxu0 %v540_v7  ;;  %497 = vmatpush3.bf16.msra.mxu1 %v548_v12 }
  0x49   :  { %478 = vmatprep.subr.bf16.mxu0 %v635_v0  ;;  %498 = vmatprep.subr.bf16.mxu1 %v635_v0 }
  0x4c   :  { %479 = vmatpush3.bf16.msra.mxu0 %v541_v9  ;;  %499 = vmatpush3.bf16.msra.mxu1 %v549_v14 }
  0x4d   :  { %480 = vmatprep.subr.bf16.mxu0 %v635_v0  ;;  %500 = vmatprep.subr.bf16.mxu1 %v635_v0 }
  0x50   :  { %481 = vmatpush3.bf16.msra.mxu0 %v542_v11  ;;  %501 = vmatpush3.bf16.msra.mxu1 %v550_v16 }
  0x51   :  { %482 = vmatprep.subr.bf16.mxu0 %v635_v0  ;;  %502 = vmatprep.subr.bf16.mxu1 %v635_v0 }
  0x54   :  { %483 = vmatpush3.bf16.msra.mxu0 %v543_v13  ;;  %503 = vmatpush3.bf16.msra.mxu1 %v551_v17 }
  0x55   :  { %508 = vmatprep.subr.bf16.mxu0 %v635_v0 }
  0x57   :  { %485 = vmatmul.mubr.bf16.vlgmr.msra.gmra.mrb[0].mxu0 %v68_v15 }
  0x58   :  { %524 = vmatprep.mubr.msk.bf16.mxu0 %vm636_vm0, %v635_v0  ;;  %509 = vmatpush3.bf16.msra.mxu0 %v552_v18 }
  0x59   :  { %510 = vmatprep.subr.bf16.mxu0 %v635_v0 }
  0x5c   :  { %511 = vmatpush3.bf16.msra.mxu0 %v553_v19 }
  0x5d   :  { %512 = vmatprep.subr.bf16.mxu0 %v635_v0 }
  0x60   :  { %513 = vmatpush3.bf16.msra.mxu0 %v554_v20 }
  0x61   :  { %514 = vmatprep.subr.bf16.mxu0 %v635_v0 }
  0x64   :  { %515 = vmatpush3.bf16.msra.mxu0 %v555_v21 }
  0x65   :  { %516 = vmatprep.subr.bf16.mxu0 %v635_v0 }
  0x68   :  { %517 = vmatpush3.bf16.msra.mxu0 %v556_v22 }
  0x69   :  { %518 = vmatprep.subr.bf16.mxu0 %v635_v0 }
  0x6c   :  { %519 = vmatpush3.bf16.msra.mxu0 %v557_v23 }
  0x6d   :  { %520 = vmatprep.subr.bf16.mxu0 %v635_v0 }
  0x70   :  { %521 = vmatpush3.bf16.msra.mxu0 %v558_v33 }
  0x71   :  { %522 = vmatprep.subr.bf16.mxu0 %v635_v0 }
  0x74   :  { %523 = vmatpush3.bf16.msra.mxu0 %v559_v34 }
 0x12a   :  { %v174_v25 = vpop.f32.mrb[0].mxu0 }
 0x12b   :  { %v175_v26 = vadd.f32 %v414_v24, %v174_v25  ;;  %v486_v27 = vpop.f32.mrb[1].mxu0 }
 0x12c   :  { %v177_v28 = vpop.f32.mrb[2].mxu0 }
 0x12d   :  { %v180_v29 = vpack.c.bf16 %v175_v26, %v175_v26  ;;  %v487_v30 = vpop.f32.mrb[3].mxu0 }
 0x12f   :  { %v181_v32 = vmax.bf16 %v637_v31, %v180_v29 }
 0x131   :  { %505 = vmatmul.mubr.bf16.vlgmr.msra.gmra.mrb[0].mxu1 %v181_v32 }
 0x204   :  { %v287_v36 = vpop.f32.mrb[0].mxu1 }
 0x205   :  { %v288_v37 = vadd.f32 %v423_v35, %v287_v36  ;;  %v506_v38 = vpop.f32.mrb[1].mxu1 }
 0x206   :  { %v290_v39 = vpop.f32.mrb[2].mxu1 }
 0x207   :  { %v293_v40 = vpack.c.bf16 %v288_v37, %v288_v37  ;;  %v507_v41 = vpop.f32.mrb[3].mxu1 }
 0x209   :  { %v294_v42 = vmax.bf16 %v637_v31, %v293_v40 }
 0x20b   :  { %525 = vmatmul.mubr.bf16.vlgmr.msra.gmra.mrb[4].mxu0 %v294_v42 }
 0x2de   :  { %v400_v44 = vpop.f32.mrb[4].mxu0 }
 0x2df   :  { %v401_v45 = vadd.f32 %v432_v43, %v400_v44  ;;  %v526_v46 = vpop.f32.mrb[5].mxu0 }
 0x2e0   :  { %v403_v47 = vpop.f32.mrb[6].mxu0 }
 0x2e1   :  { %v406_v48 = vpack.c.bf16 %v401_v45, %v401_v45  ;;  %v527_v49 = vpop.f32.mrb[7].mxu0 }
 0x2e3   :  { %407 = vst [vmem:[%s782_s7] sm:$0xf] %v406_v48 }
 0x2e4   :  { %412 = vsyncpa [#allocation3], 1 }
 0x2e5   :  { %413 = vsyncpa [#allocation5], 1 }

</bundles_post_ra>
